<compile_context>
chip_gen: v6e
topology: v6e:2x2x1
jax: 0.10.0
libtpu: 0.0.40
codegen_flags: <defaults>
</compile_context>

<pallas_src>
import functools

import jax
import jax.numpy as jnp
from jax.experimental import pallas as pl
from jax.experimental.pallas import tpu as pltpu


def blocknet_conv_kernel(w_ref, taps_ref, out_ref, *, n_taps):
    # w_ref:    SMEM [n_taps]             flattened conv weight, (r, c) row-major
    # taps_ref: VMEM [n_taps, bt, h_out]  im2col'd input taps
    # out_ref:  VMEM [bt, h_out]          conv output (== value returned by forward)
    acc = taps_ref[0].astype(jnp.float32) * w_ref[0]
    for k in range(1, n_taps):                     # static unroll over fs*4 taps
        acc = acc + taps_ref[k].astype(jnp.float32) * w_ref[k]
    out_ref[...] = acc.astype(out_ref.dtype)


def _pick_b_tile(B, max_tile=512):
    """Largest divisor of B that is <= max_tile (keeps blocks well under VMEM,
    including the v7x 64 MiB budget). Collapses to B (grid=(1,)) for small B."""
    if B <= max_tile:
        return B
    for t in range(max_tile, 0, -1):
        if B % t == 0:
            return t
    return B


@functools.partial(jax.jit, static_argnames=("filter_size", "b_tile"))
def blocknet_forward(x_nchw, conv_w, dense_w=None, dense_b=None, *,
                     filter_size, b_tile=None):
    """Net.forward(x, block='last') with a BlockNet last block.

    dense_w / dense_b are accepted for signature parity with the module but are
    unused: the reference forward computes dense(x) and then returns x anyway.
    """
    del dense_w, dense_b   # dead code in the reference forward
    B, C, H, W = x_nchw.shape
    assert C == 1 and W == 4, "BlockNet expects NCHW input [B, 1, H, 4]"
    h_out = H - (filter_size - 1)
    n_taps = filter_size * 4

    # ---- layout glue (im2col), done once in the wrapper --------------------
    x = x_nchw[:, 0, :, :]                                       # [B, H, 4]
    taps = jnp.stack(
        [x[:, r:r + h_out, c] for r in range(filter_size) for c in range(4)],
        axis=0)                                                  # [fs*4, B, h_out]
    w_flat = conv_w.reshape(-1).astype(jnp.float32)              # [fs*4], (r, c) order

    # ---- batch tiling: one grid step per B-tile, "parallel" for megacore ----
    if b_tile is None:
        b_tile = _pick_b_tile(B)
    assert B % b_tile == 0, "b_tile must divide B"
    grid = (B // b_tile,)

    kernel = functools.partial(blocknet_conv_kernel, n_taps=n_taps)
    out = pl.pallas_call(
        kernel,
        out_shape=jax.ShapeDtypeStruct((B, h_out), x.dtype),
        grid=grid,
        in_specs=[
            pl.BlockSpec(memory_space=pltpu.MemorySpace.SMEM),           # fs*4 scalars
            pl.BlockSpec((n_taps, b_tile, h_out), lambda i: (0, i, 0)),  # taps tile
        ],
        out_specs=pl.BlockSpec((b_tile, h_out), lambda i: (i, 0)),
        compiler_params=pltpu.CompilerParams(
            dimension_semantics=("parallel",)),
    )(w_flat, taps)
    return out


def reference_forward(x_nchw, conv_w):
    out = jax.lax.conv_general_dilated(
        x_nchw, conv_w, window_strides=(1, 1), padding="VALID",
        dimension_numbers=("NCHW", "OIHW", "NCHW"))
    return out.reshape(out.shape[0], out.shape[2])


if __name__ == "__main__":
    key = jax.random.PRNGKey(0)
    k1, k2, k3 = jax.random.split(key, 3)

    # Small shapes consistent with the module (H = "size", width must be 4).
    B, H, W = 2, 16, 4
    filter_size = 3
    h_out = H - (filter_size - 1)

    x = jax.random.normal(k1, (B, 1, H, W), dtype=jnp.float32)
    conv_w = 0.1 * jax.random.normal(k2, (1, 1, filter_size, 4), dtype=jnp.float32)

    out = blocknet_forward(x, conv_w, filter_size=filter_size)
    out = jax.block_until_ready(out)

    ref = reference_forward(x, conv_w)
    assert out.shape == (B, h_out), out.shape
    assert jnp.allclose(out, ref, atol=1e-5, rtol=1e-5), \
        f"max err {jnp.max(jnp.abs(out - ref))}"

    # Also exercise the batch-tiled (grid > 1) path once.
    B2 = 16
    x2 = jax.random.normal(k3, (B2, 1, H, W), dtype=jnp.float32)
    out2 = blocknet_forward(x2, conv_w, filter_size=filter_size, b_tile=8)
    out2 = jax.block_until_ready(out2)
    ref2 = reference_forward(x2, conv_w)
    assert jnp.allclose(out2, ref2, atol=1e-5, rtol=1e-5), \
        f"max err {jnp.max(jnp.abs(out2 - ref2))}"

    print("KERNEL_OK")
</pallas_src>

<mosaic_0001>
module attributes {stable_mosaic.version = 11 : i64} {
  func.func @blocknet_conv_kernel(%arg0: i32, %arg1: memref<12xf32, #tpu.memory_space<smem>>, %arg2: memref<12x2x14xf32, #tpu.memory_space<vmem>>, %arg3: memref<2x14xf32, #tpu.memory_space<vmem>>) attributes {dimension_semantics = [#tpu.dimension_semantics<parallel>], iteration_bounds = array<i64: 1>, scalar_prefetch = 0 : i64, scratch_operands = 0 : i64, tpu.core_type = #tpu.core_type<tc>, window_params = [{transform_indices = @transform_0, window_bounds = array<i64: 12>}, {transform_indices = @transform_1, window_bounds = array<i64: 12, 2, 14>}, {transform_indices = @transform_2, window_bounds = array<i64: 2, 14>}]} {
    %c0 = arith.constant 0 : index
    %c0_0 = arith.constant 0 : index
    %c0_1 = arith.constant 0 : index
    %0 = vector.load %arg2[%c0, %c0_0, %c0_1] : memref<12x2x14xf32, #tpu.memory_space<vmem>>, vector<1x2x14xf32>
    %1 = vector.shape_cast %0 : vector<1x2x14xf32> to vector<2x14xf32>
    %c0_2 = arith.constant 0 : index
    %2 = memref.load %arg1[%c0_2] : memref<12xf32, #tpu.memory_space<smem>>
    %3 = vector.broadcast %2 : f32 to vector<2x14xf32>
    %4 = arith.mulf %1, %3 : vector<2x14xf32>
    %c1 = arith.constant 1 : index
    %c0_3 = arith.constant 0 : index
    %c0_4 = arith.constant 0 : index
    %5 = vector.load %arg2[%c1, %c0_3, %c0_4] : memref<12x2x14xf32, #tpu.memory_space<vmem>>, vector<1x2x14xf32>
    %6 = vector.shape_cast %5 : vector<1x2x14xf32> to vector<2x14xf32>
    %c1_5 = arith.constant 1 : index
    %7 = memref.load %arg1[%c1_5] : memref<12xf32, #tpu.memory_space<smem>>
    %8 = vector.broadcast %7 : f32 to vector<2x14xf32>
    %9 = arith.mulf %6, %8 : vector<2x14xf32>
    %10 = arith.addf %4, %9 : vector<2x14xf32>
    %c2 = arith.constant 2 : index
    %c0_6 = arith.constant 0 : index
    %c0_7 = arith.constant 0 : index
    %11 = vector.load %arg2[%c2, %c0_6, %c0_7] : memref<12x2x14xf32, #tpu.memory_space<vmem>>, vector<1x2x14xf32>
    %12 = vector.shape_cast %11 : vector<1x2x14xf32> to vector<2x14xf32>
    %c2_8 = arith.constant 2 : index
    %13 = memref.load %arg1[%c2_8] : memref<12xf32, #tpu.memory_space<smem>>
    %14 = vector.broadcast %13 : f32 to vector<2x14xf32>
    %15 = arith.mulf %12, %14 : vector<2x14xf32>
    %16 = arith.addf %10, %15 : vector<2x14xf32>
    %c3 = arith.constant 3 : index
    %c0_9 = arith.constant 0 : index
    %c0_10 = arith.constant 0 : index
    %17 = vector.load %arg2[%c3, %c0_9, %c0_10] : memref<12x2x14xf32, #tpu.memory_space<vmem>>, vector<1x2x14xf32>
    %18 = vector.shape_cast %17 : vector<1x2x14xf32> to vector<2x14xf32>
    %c3_11 = arith.constant 3 : index
    %19 = memref.load %arg1[%c3_11] : memref<12xf32, #tpu.memory_space<smem>>
    %20 = vector.broadcast %19 : f32 to vector<2x14xf32>
    %21 = arith.mulf %18, %20 : vector<2x14xf32>
    %22 = arith.addf %16, %21 : vector<2x14xf32>
    %c4 = arith.constant 4 : index
    %c0_12 = arith.constant 0 : index
    %c0_13 = arith.constant 0 : index
    %23 = vector.load %arg2[%c4, %c0_12, %c0_13] : memref<12x2x14xf32, #tpu.memory_space<vmem>>, vector<1x2x14xf32>
    %24 = vector.shape_cast %23 : vector<1x2x14xf32> to vector<2x14xf32>
    %c4_14 = arith.constant 4 : index
    %25 = memref.load %arg1[%c4_14] : memref<12xf32, #tpu.memory_space<smem>>
    %26 = vector.broadcast %25 : f32 to vector<2x14xf32>
    %27 = arith.mulf %24, %26 : vector<2x14xf32>
    %28 = arith.addf %22, %27 : vector<2x14xf32>
    %c5 = arith.constant 5 : index
    %c0_15 = arith.constant 0 : index
    %c0_16 = arith.constant 0 : index
    %29 = vector.load %arg2[%c5, %c0_15, %c0_16] : memref<12x2x14xf32, #tpu.memory_space<vmem>>, vector<1x2x14xf32>
    %30 = vector.shape_cast %29 : vector<1x2x14xf32> to vector<2x14xf32>
    %c5_17 = arith.constant 5 : index
    %31 = memref.load %arg1[%c5_17] : memref<12xf32, #tpu.memory_space<smem>>
    %32 = vector.broadcast %31 : f32 to vector<2x14xf32>
    %33 = arith.mulf %30, %32 : vector<2x14xf32>
    %34 = arith.addf %28, %33 : vector<2x14xf32>
    %c6 = arith.constant 6 : index
    %c0_18 = arith.constant 0 : index
    %c0_19 = arith.constant 0 : index
    %35 = vector.load %arg2[%c6, %c0_18, %c0_19] : memref<12x2x14xf32, #tpu.memory_space<vmem>>, vector<1x2x14xf32>
    %36 = vector.shape_cast %35 : vector<1x2x14xf32> to vector<2x14xf32>
    %c6_20 = arith.constant 6 : index
    %37 = memref.load %arg1[%c6_20] : memref<12xf32, #tpu.memory_space<smem>>
    %38 = vector.broadcast %37 : f32 to vector<2x14xf32>
    %39 = arith.mulf %36, %38 : vector<2x14xf32>
    %40 = arith.addf %34, %39 : vector<2x14xf32>
    %c7 = arith.constant 7 : index
    %c0_21 = arith.constant 0 : index
    %c0_22 = arith.constant 0 : index
    %41 = vector.load %arg2[%c7, %c0_21, %c0_22] : memref<12x2x14xf32, #tpu.memory_space<vmem>>, vector<1x2x14xf32>
    %42 = vector.shape_cast %41 : vector<1x2x14xf32> to vector<2x14xf32>
    %c7_23 = arith.constant 7 : index
    %43 = memref.load %arg1[%c7_23] : memref<12xf32, #tpu.memory_space<smem>>
    %44 = vector.broadcast %43 : f32 to vector<2x14xf32>
    %45 = arith.mulf %42, %44 : vector<2x14xf32>
    %46 = arith.addf %40, %45 : vector<2x14xf32>
    %c8 = arith.constant 8 : index
    %c0_24 = arith.constant 0 : index
    %c0_25 = arith.constant 0 : index
    %47 = vector.load %arg2[%c8, %c0_24, %c0_25] : memref<12x2x14xf32, #tpu.memory_space<vmem>>, vector<1x2x14xf32>
    %48 = vector.shape_cast %47 : vector<1x2x14xf32> to vector<2x14xf32>
    %c8_26 = arith.constant 8 : index
    %49 = memref.load %arg1[%c8_26] : memref<12xf32, #tpu.memory_space<smem>>
    %50 = vector.broadcast %49 : f32 to vector<2x14xf32>
    %51 = arith.mulf %48, %50 : vector<2x14xf32>
    %52 = arith.addf %46, %51 : vector<2x14xf32>
    %c9 = arith.constant 9 : index
    %c0_27 = arith.constant 0 : index
    %c0_28 = arith.constant 0 : index
    %53 = vector.load %arg2[%c9, %c0_27, %c0_28] : memref<12x2x14xf32, #tpu.memory_space<vmem>>, vector<1x2x14xf32>
    %54 = vector.shape_cast %53 : vector<1x2x14xf32> to vector<2x14xf32>
    %c9_29 = arith.constant 9 : index
    %55 = memref.load %arg1[%c9_29] : memref<12xf32, #tpu.memory_space<smem>>
    %56 = vector.broadcast %55 : f32 to vector<2x14xf32>
    %57 = arith.mulf %54, %56 : vector<2x14xf32>
    %58 = arith.addf %52, %57 : vector<2x14xf32>
    %c10 = arith.constant 10 : index
    %c0_30 = arith.constant 0 : index
    %c0_31 = arith.constant 0 : index
    %59 = vector.load %arg2[%c10, %c0_30, %c0_31] : memref<12x2x14xf32, #tpu.memory_space<vmem>>, vector<1x2x14xf32>
    %60 = vector.shape_cast %59 : vector<1x2x14xf32> to vector<2x14xf32>
    %c10_32 = arith.constant 10 : index
    %61 = memref.load %arg1[%c10_32] : memref<12xf32, #tpu.memory_space<smem>>
    %62 = vector.broadcast %61 : f32 to vector<2x14xf32>
    %63 = arith.mulf %60, %62 : vector<2x14xf32>
    %64 = arith.addf %58, %63 : vector<2x14xf32>
    %c11 = arith.constant 11 : index
    %c0_33 = arith.constant 0 : index
    %c0_34 = arith.constant 0 : index
    %65 = vector.load %arg2[%c11, %c0_33, %c0_34] : memref<12x2x14xf32, #tpu.memory_space<vmem>>, vector<1x2x14xf32>
    %66 = vector.shape_cast %65 : vector<1x2x14xf32> to vector<2x14xf32>
    %c11_35 = arith.constant 11 : index
    %67 = memref.load %arg1[%c11_35] : memref<12xf32, #tpu.memory_space<smem>>
    %68 = vector.broadcast %67 : f32 to vector<2x14xf32>
    %69 = arith.mulf %66, %68 : vector<2x14xf32>
    %70 = arith.addf %64, %69 : vector<2x14xf32>
    %c0_36 = arith.constant 0 : index
    %c0_37 = arith.constant 0 : index
    %71 = vector.load %arg3[%c0_36, %c0_37] : memref<2x14xf32, #tpu.memory_space<vmem>>, vector<2x14xf32>
    tpu.vector_store %arg3[%c0_36, %c0_37], %70 {strides = array<i32>} : memref<2x14xf32, #tpu.memory_space<vmem>>, vector<2x14xf32>,
    return
  }
  func.func @transform_0(%arg0: i32) -> i32 {
    %c0_i32 = arith.constant 0 : i32
    %c0_i32_0 = arith.constant 0 : i32
    return %c0_i32 : i32
  }
  func.func @transform_1(%arg0: i32) -> (i32, i32, i32) {
    %c0_i32 = arith.constant 0 : i32
    %c0_i32_0 = arith.constant 0 : i32
    %c0_i32_1 = arith.constant 0 : i32
    return %c0_i32, %arg0, %c0_i32_0 : i32, i32, i32
  }
  func.func @transform_2(%arg0: i32) -> (i32, i32) {
    %c0_i32 = arith.constant 0 : i32
    %c0_i32_0 = arith.constant 0 : i32
    return %arg0, %c0_i32 : i32, i32
  }
}

</mosaic_0001>

<bundles_post_ra>
// kernel: blocknet_forward.1
= control target key start
LH: loop header
LB: loop body
LE: loop exit
PB: predicated region body
PF: predicated region fallthrough
CT: control target
= control target key end

     0   :  { %7 = vsyncpa [#allocation4], 0  ;;  %s231_s0 = inlined_call_operand.vmem [shape: f32[12], index: 0, kind: input, shape index: {}]   ;;  %s232_s1 = inlined_call_operand.vmem [shape: f32[12,2,14], index: 1, kind: input, shape index: {}]   ;;  %s233_s2 = inlined_call_operand.hbm [shape: f32[2,14], index: 2, kind: output, shape index: {}]  }
   0x1   :  { %8 = vsyncpa [#allocation3], 0  ;;  %s15_s11 = sshll.u32 %s231_s0, 4  ;;  %s16_s11 = int_to_ptr.vmem [resolvable:$true] %s15_s11 }
   0x2   :  { %s136_s12 = scalar_lea.vmem %s16_s11, 16  ;;  %p141_p1 = scmp.lt.s32.totalorder %s16_s11, %s16_s11 }
   0x3   :  { %p137_p0 = scmp.ne.s32.totalorder %s16_s11, %s136_s12  ;;  %p142_p2 = scmp.lt.s32.totalorder %s136_s12, %s136_s12 }
   0x5   :  { %p143_p3 = por %p142_p2, %p141_p1 }
   0x7   :  { %p144_p4 = pnand %p143_p3, %p137_p0 }
   0x9   :  { %147 = shalt.err (!%p144_p4)
}
   0xa   :  { %s172_s13 = smov [#allocation2]  }
   0xb   :  { %18 = dma.vmem_to_smem %s16_s11, 16, %s172_s13, [#allocation4]  }
   0xc   :  { %168 = dma.done.wait [#allocation4], 16  }
   0xd   :  { %169 = vsyncadd [#allocation4], 4294967280 }
   0xe   :  { %24 = sfence }
   0xf   :  { %s26_s14 = sld [smem:[#allocation2]]  ;;  %v25_v0 = vld [vmem:[%s232_s1] sm:$0x3]  ;;  %v112_v1 = vld [vmem:[%s232_s1 + $0x2] sm:$0x3]  ;;  %s173_s20 = smov [#allocation5]  }
  0x10   :  { %s113_s15 = sld [smem:[#allocation2 + $0x1]]  ;;  %v114_v3 = vld [vmem:[%s232_s1 + $0x4] sm:$0x3]  ;;  %v116_v6 = vld [vmem:[%s232_s1 + $0x6] sm:$0x3]  ;;  %s103_s21 = sshll.u32 %s173_s20, 4  ;;  %s104_s21 = int_to_ptr.vmem [resolvable:$true] %s103_s21 }
  0x11   :  { %s115_s16 = sld [smem:[#allocation2 + $0x2]]  ;;  %v118_v11 = vld [vmem:[%s232_s1 + $0x8] sm:$0x3]  ;;  %v120_v15 = vld [vmem:[%s232_s1 + $0xa] sm:$0x3]  ;;  %vm95_vm0 = vcmask 107520   ;;  %p153_p6 = scmp.lt.s32.totalorder %s104_s21, %s104_s21 }
  0x12   :  { %s117_s17 = sld [smem:[#allocation2 + $0x3]]  ;;  %v122_v19 = vld [vmem:[%s232_s1 + $0xc] sm:$0x3]  ;;  %v124_v23 = vld [vmem:[%s232_s1 + $0xe] sm:$0x3] }
  0x13   :  { %s119_s0 = sld [smem:[#allocation2 + $0x4]]  ;;  %v126_v27 = vld [vmem:[%s232_s1 + $0x10] sm:$0x3]  ;;  %v128_v31 = vld [vmem:[%s232_s1 + $0x12] sm:$0x3] }
  0x14   :  { %s121_s22 = sld [smem:[#allocation2 + $0x5]]  ;;  %v130_v35 = vld [vmem:[%s232_s1 + $0x14] sm:$0x3]  ;;  %v132_v39 = vld [vmem:[%s232_s1 + $0x16] sm:$0x3] }
  0x15   :  { %v27_v2 = vstv %s26_s14  ;;  %s123_s25 = sld [smem:[#allocation2 + $0x6]] }
  0x16   :  { %v28_v4 = vmul.f32 %v27_v2, %v25_v0  ;;  %v32_v5 = vstv %s113_s15  ;;  %s125_s28 = sld [smem:[#allocation2 + $0x7]] }
  0x17   :  { %v33_v7 = vmul.f32 %v112_v1, %v32_v5  ;;  %v38_v8 = vstv %s115_s16  ;;  %s127_s3 = sld [smem:[#allocation2 + $0x8]] }
  0x18   :  { %v39_v9 = vmul.f32 %v114_v3, %v38_v8  ;;  %v44_v10 = vstv %s117_s17  ;;  %s129_s6 = sld [smem:[#allocation2 + $0x9]] }
  0x19   :  { %v34_v12 = vadd.f32 %v33_v7, %v28_v4  ;;  %v45_v13 = vmul.f32 %v116_v6, %v44_v10  ;;  %v50_v14 = vstv %s119_s0  ;;  %s131_s9 = sld [smem:[#allocation2 + $0xa]] }
  0x1a   :  { %v56_v16 = vstv %s121_s22  ;;  %v51_v18 = vmul.f32 %v118_v11, %v50_v14  ;;  %s133_s12 = sld [smem:[#allocation2 + $0xb]]  ;;  %s148_s22 = scalar_lea.vmem %s104_s21, 32 }
  0x1b   :  { %v40_v17 = vadd.f32 %v39_v9, %v34_v12  ;;  %v62_v20 = vstv %s123_s25  ;;  %v57_v22 = vmul.f32 %v120_v15, %v56_v16  ;;  %p149_p5 = scmp.ne.s32.totalorder %s104_s21, %s148_s22  ;;  %p154_p7 = scmp.lt.s32.totalorder %s148_s22, %s148_s22 }
  0x1c   :  { %v68_v24 = vstv %s125_s28  ;;  %v63_v26 = vmul.f32 %v122_v19, %v62_v20 }
  0x1d   :  { %v46_v21 = vadd.f32 %v45_v13, %v40_v17  ;;  %v74_v28 = vstv %s127_s3  ;;  %v69_v30 = vmul.f32 %v124_v23, %v68_v24  ;;  %p155_p8 = por %p154_p7, %p153_p6 }
  0x1e   :  { %v80_v32 = vstv %s129_s6  ;;  %v75_v34 = vmul.f32 %v126_v27, %v74_v28 }
  0x1f   :  { %v52_v25 = vadd.f32 %v51_v18, %v46_v21  ;;  %v86_v36 = vstv %s131_s9  ;;  %v81_v38 = vmul.f32 %v128_v31, %v80_v32  ;;  %p156_p9 = pnand %p155_p8, %p149_p5 }
  0x20   :  { %v92_v40 = vstv %s133_s12  ;;  %v87_v42 = vmul.f32 %v130_v35, %v86_v36 }
  0x21   :  { %v58_v29 = vadd.f32 %v57_v22, %v52_v25  ;;  %v93_v44 = vmul.f32 %v132_v39, %v92_v40 }
  0x23   :  { %v64_v33 = vadd.f32 %v63_v26, %v58_v29 }
  0x25   :  { %v70_v37 = vadd.f32 %v69_v30, %v64_v33 }
  0x27   :  { %v76_v41 = vadd.f32 %v75_v34, %v70_v37 }
  0x29   :  { %v82_v43 = vadd.f32 %v81_v38, %v76_v41 }
  0x2b   :  { %v88_v45 = vadd.f32 %v87_v42, %v82_v43 }
  0x2d   :  { %v94_v46 = vadd.f32 %v93_v44, %v88_v45 }
  0x2f   :  { %96 = vst.msk [vmem:[#allocation5] sm:$0x3] %vm95_vm0, %v94_v46 }
  0x30   :  { %159 = shalt.err (!%p156_p9)
}
  0x31   :  { %106 = dma.vmem_to_hbm [thread:$0]  %s104_s21, 32, %s233_s2, [#allocation3]  }
  0x32   :  { %170 = dma.done.wait [#allocation3], 32  }
  0x33   :  { %171 = vsyncadd [#allocation3], 4294967264 }
  0x34   :  { %110 = vsyncpa [#allocation3], 1 }
  0x35   :  { %111 = vsyncpa [#allocation4], 1 }

</bundles_post_ra>
